<compile_context>
chip_gen: v7x
topology: tpu7x:2x2x1
jax: 0.10.0
libtpu: 0.0.40
codegen_flags: <defaults>
</compile_context>

<pallas_src>
import jax
import jax.numpy as jnp
from jax.experimental import pallas as pl
from jax.experimental.pallas import tpu as pltpu


def _round_up(x, m):
    return (x + m - 1) // m * m


def _pick_tile(dim, pref, quantum):
    """Return (tile, padded_dim): tile is a multiple of `quantum` that evenly
    divides padded_dim; tile is `pref` for large dims, else the rounded dim."""
    if dim <= pref:
        t = _round_up(dim, quantum)
        return t, t
    return pref, _round_up(dim, pref)


def _cond_linear_kernel(x_ref, w_ref, g_ref, b_ref, o_ref, acc_ref):
    # x_ref : (1, TS, TK)  x-dtype (cast to bf16 in-register for the MXU)
    # w_ref : (TK, TN)     bf16
    # g_ref : (1, 1, TN)   f32   per-batch gamma row
    # b_ref : (1, TN)      f32   bias row
    # o_ref : (1, TS, TN)  out dtype
    # acc_ref: (TS, TN)    f32 scratch accumulator
    k = pl.program_id(3)

    @pl.when(k == 0)
    def _init():
        acc_ref[...] = jnp.zeros_like(acc_ref)

    acc_ref[...] += jnp.dot(x_ref[0].astype(jnp.bfloat16), w_ref[...],
                            preferred_element_type=jnp.float32)

    @pl.when(k == pl.num_programs(3) - 1)
    def _finalize():
        # gamma * (x @ W^T + b); the (1, TN) rows broadcast along sublanes.
        o_ref[0] = (g_ref[0] * (acc_ref[...] + b_ref[...])).astype(o_ref.dtype)


def conditional_linear(x, t, lin_w, lin_b, embed_w):
    """x: (B, S, num_in), t: (B,) int, lin_w: (num_out, num_in),
    lin_b: (num_out,), embed_w: (n_steps, num_out). Returns (B, S, num_out)."""
    B, S, num_in = x.shape
    num_out = lin_w.shape[0]
    out_dtype = x.dtype

    # ---- wrapper glue: tiny embedding gather + layout / dtype prep ----
    gamma = embed_w[t.astype(jnp.int32)].astype(jnp.float32)   # (B, num_out)
    gamma = gamma[:, None, :]                                   # (B, 1, num_out)
    bias = lin_b.astype(jnp.float32)[None, :]                   # (1, num_out)
    w_t = lin_w.T.astype(jnp.bfloat16)                          # (num_in, num_out)

    # ---- tiling: rows to 8/16 quantum, K/N lane-dense multiples of 128 ----
    s_quantum = 8 if x.dtype.itemsize == 4 else 16   # bf16 packs 16 rows / tile
    TS, S_pad = _pick_tile(S, 512, s_quantum)
    TK, K_pad = _pick_tile(num_in, 1024, 128)
    TN, N_pad = _pick_tile(num_out, 512, 128)

    x_p = jnp.pad(x, ((0, 0), (0, S_pad - S), (0, K_pad - num_in)))
    w_p = jnp.pad(w_t, ((0, K_pad - num_in), (0, N_pad - num_out)))
    g_p = jnp.pad(gamma, ((0, 0), (0, 0), (0, N_pad - num_out)))
    b_p = jnp.pad(bias, ((0, 0), (0, N_pad - num_out)))

    grid = (B, S_pad // TS, N_pad // TN, K_pad // TK)

    grid_spec = pltpu.PrefetchScalarGridSpec(
        num_scalar_prefetch=0,
        grid=grid,
        in_specs=[
            pl.BlockSpec((1, TS, TK), lambda b, s, j, k: (b, s, k)),   # x
            pl.BlockSpec((TK, TN),    lambda b, s, j, k: (k, j)),      # W^T bf16
            pl.BlockSpec((1, 1, TN),  lambda b, s, j, k: (b, 0, j)),   # gamma
            pl.BlockSpec((1, TN),     lambda b, s, j, k: (0, j)),      # bias
        ],
        out_specs=pl.BlockSpec((1, TS, TN), lambda b, s, j, k: (b, s, j)),
        scratch_shapes=[pltpu.VMEM((TS, TN), jnp.float32)],
    )

    cost = pl.CostEstimate(
        flops=2 * B * S_pad * K_pad * N_pad + 2 * B * S_pad * N_pad,
        transcendentals=0,
        bytes_accessed=(x_p.size * x_p.dtype.itemsize
                        + w_p.size * w_p.dtype.itemsize
                        + g_p.size * 4 + b_p.size * 4
                        + B * S_pad * N_pad * jnp.dtype(out_dtype).itemsize),
    )

    out_pad = pl.pallas_call(
        _cond_linear_kernel,
        out_shape=jax.ShapeDtypeStruct((B, S_pad, N_pad), out_dtype),
        grid_spec=grid_spec,
        compiler_params=pltpu.CompilerParams(
            dimension_semantics=("parallel", "parallel", "parallel", "arbitrary")),
        cost_estimate=cost,
    )(x_p, w_p, g_p, b_p)

    return out_pad[:, :S, :num_out]


def _reference_f32(x, t, lin_w, lin_b, embed_w):
    out = jnp.einsum("bsi,oi->bso", x, lin_w) + lin_b
    gamma = embed_w[t.astype(jnp.int32)][:, None, :]
    return gamma * out


def _reference_bf16_matmul(x, t, lin_w, lin_b, embed_w):
    # Same numerics as the kernel: bf16 inputs to the matmul, f32 accumulate,
    # f32 epilogue  gamma * (out + b).
    xb = x.astype(jnp.bfloat16)
    wb = lin_w.astype(jnp.bfloat16)
    out = jnp.einsum("bsi,oi->bso", xb, wb,
                     preferred_element_type=jnp.float32) + lin_b
    gamma = embed_w[t.astype(jnp.int32)][:, None, :]
    return gamma * out


if __name__ == "__main__":
    B, S = 2, 8
    num_in, num_out, n_steps = 32, 32, 10

    key = jax.random.PRNGKey(0)
    kx, kt, kw, kb, ke = jax.random.split(key, 5)

    x = jax.random.normal(kx, (B, S, num_in), dtype=jnp.float32)
    t = jax.random.randint(kt, (B,), 0, n_steps, dtype=jnp.int32)

    # nn.Linear init: U(-1/sqrt(num_in), 1/sqrt(num_in)) for weight and bias.
    bound = 1.0 / (num_in ** 0.5)
    lin_w = jax.random.uniform(kw, (num_out, num_in), jnp.float32, -bound, bound)
    lin_b = jax.random.uniform(kb, (num_out,), jnp.float32, -bound, bound)
    # self.embed.weight.data.uniform_() -> U(0, 1)
    embed_w = jax.random.uniform(ke, (n_steps, num_out), jnp.float32, 0.0, 1.0)

    out = conditional_linear(x, t, lin_w, lin_b, embed_w)
    out = jax.block_until_ready(out)
    assert out.shape == (B, S, num_out)
    assert out.dtype == x.dtype

    # Tight check against a reference with identical (bf16-matmul) numerics.
    ref_bf16 = _reference_bf16_matmul(x, t, lin_w, lin_b, embed_w)
    assert jnp.allclose(out, ref_bf16, atol=1e-4, rtol=1e-4)

    # Semantic check against the full-f32 PyTorch-equivalent reference
    # (tolerance accounts for the bf16 MXU inputs).
    ref_f32 = _reference_f32(x, t, lin_w, lin_b, embed_w)
    assert jnp.allclose(out, ref_f32, atol=5e-2, rtol=5e-2)

    print("KERNEL_OK")
</pallas_src>

<mosaic_0001>
module attributes {stable_mosaic.version = 11 : i64} {
  func.func @_cond_linear_kernel(%arg0: i32, %arg1: i32, %arg2: i32, %arg3: i32, %arg4: memref<1x8x128xf32, #tpu.memory_space<vmem>>, %arg5: memref<128x128xbf16, #tpu.memory_space<vmem>>, %arg6: memref<1x1x128xf32, #tpu.memory_space<vmem>>, %arg7: memref<1x128xf32, #tpu.memory_space<vmem>>, %arg8: memref<1x8x128xf32, #tpu.memory_space<vmem>>, %arg9: memref<8x128xf32, #tpu.memory_space<vmem>>) attributes {dimension_semantics = [#tpu.dimension_semantics<parallel>, #tpu.dimension_semantics<parallel>, #tpu.dimension_semantics<parallel>, #tpu.dimension_semantics<arbitrary>], iteration_bounds = array<i64: 2, 1, 1, 1>, scalar_prefetch = 0 : i64, scratch_operands = 1 : i64, tpu.core_type = #tpu.core_type<tc>, window_params = [{transform_indices = @transform_0, window_bounds = array<i64: 1, 8, 128>}, {transform_indices = @transform_1, window_bounds = array<i64: 128, 128>}, {transform_indices = @transform_2, window_bounds = array<i64: 1, 1, 128>}, {transform_indices = @transform_3, window_bounds = array<i64: 1, 128>}, {transform_indices = @transform_4, window_bounds = array<i64: 1, 8, 128>}]} {
    %c0_i32 = arith.constant 0 : i32
    %0 = arith.cmpi eq, %arg3, %c0_i32 : i32
    %1 = arith.extui %0 : i1 to i32
    %c0_i32_0 = arith.constant 0 : i32
    %2 = arith.cmpi ne, %1, %c0_i32_0 : i32
    scf.if %2 {
      %cst_11 = arith.constant 0.000000e+00 : f32
      %14 = vector.broadcast %cst_11 : f32 to vector<8x128xf32>
      %c0_12 = arith.constant 0 : index
      %c0_13 = arith.constant 0 : index
      %15 = vector.load %arg9[%c0_12, %c0_13] : memref<8x128xf32, #tpu.memory_space<vmem>>, vector<8x128xf32>
      tpu.vector_store %arg9[%c0_12, %c0_13], %14 {strides = array<i32>} : memref<8x128xf32, #tpu.memory_space<vmem>>, vector<8x128xf32>,
    } else {
    }
    %c0 = arith.constant 0 : index
    %c0_1 = arith.constant 0 : index
    %3 = vector.load %arg9[%c0, %c0_1] : memref<8x128xf32, #tpu.memory_space<vmem>>, vector<8x128xf32>
    %c0_2 = arith.constant 0 : index
    %c0_3 = arith.constant 0 : index
    %c0_4 = arith.constant 0 : index
    %4 = vector.load %arg4[%c0_2, %c0_3, %c0_4] : memref<1x8x128xf32, #tpu.memory_space<vmem>>, vector<1x8x128xf32>
    %5 = vector.shape_cast %4 : vector<1x8x128xf32> to vector<8x128xf32>
    %6 = arith.truncf %5 : vector<8x128xf32> to vector<8x128xbf16>
    %c0_5 = arith.constant 0 : index
    %c0_6 = arith.constant 0 : index
    %7 = vector.load %arg5[%c0_5, %c0_6] : memref<128x128xbf16, #tpu.memory_space<vmem>>, vector<128x128xbf16>
    %cst = arith.constant dense<0.000000e+00> : vector<8x128xf32>
    %8 = tpu.matmul %6, %7, %cst {dimension_numbers = #tpu.dot_dimension_numbers<[1], [0], [0], [1], [0, 0, 1, 1], [], []>} : vector<8x128xbf16>, vector<128x128xbf16>, vector<8x128xf32> -> vector<8x128xf32>
    %9 = arith.addf %3, %8 : vector<8x128xf32>
    %c0_7 = arith.constant 0 : index
    %c0_8 = arith.constant 0 : index
    %10 = vector.load %arg9[%c0_7, %c0_8] : memref<8x128xf32, #tpu.memory_space<vmem>>, vector<8x128xf32>
    tpu.vector_store %arg9[%c0_7, %c0_8], %9 {strides = array<i32>} : memref<8x128xf32, #tpu.memory_space<vmem>>, vector<8x128xf32>,
    %c0_i32_9 = arith.constant 0 : i32
    %11 = arith.cmpi eq, %arg3, %c0_i32_9 : i32
    %12 = arith.extui %11 : i1 to i32
    %c0_i32_10 = arith.constant 0 : i32
    %13 = arith.cmpi ne, %12, %c0_i32_10 : i32
    scf.if %13 {
      %c0_11 = arith.constant 0 : index
      %c0_12 = arith.constant 0 : index
      %c0_13 = arith.constant 0 : index
      %14 = vector.load %arg6[%c0_11, %c0_12, %c0_13] : memref<1x1x128xf32, #tpu.memory_space<vmem>>, vector<1x1x128xf32>
      %15 = vector.shape_cast %14 : vector<1x1x128xf32> to vector<1x128xf32>
      %c0_14 = arith.constant 0 : index
      %c0_15 = arith.constant 0 : index
      %16 = vector.load %arg9[%c0_14, %c0_15] : memref<8x128xf32, #tpu.memory_space<vmem>>, vector<8x128xf32>
      %c0_16 = arith.constant 0 : index
      %c0_17 = arith.constant 0 : index
      %17 = vector.load %arg7[%c0_16, %c0_17] : memref<1x128xf32, #tpu.memory_space<vmem>>, vector<1x128xf32>
      %18 = vector.broadcast %17 : vector<1x128xf32> to vector<8x128xf32>
      %19 = arith.addf %16, %18 : vector<8x128xf32>
      %20 = vector.broadcast %15 : vector<1x128xf32> to vector<8x128xf32>
      %21 = arith.mulf %20, %19 : vector<8x128xf32>
      %c0_18 = arith.constant 0 : index
      %c0_19 = arith.constant 0 : index
      %c0_20 = arith.constant 0 : index
      %22 = vector.load %arg8[%c0_18, %c0_19, %c0_20] : memref<1x8x128xf32, #tpu.memory_space<vmem>>, vector<1x8x128xf32>
      %23 = vector.shape_cast %22 : vector<1x8x128xf32> to vector<8x128xf32>
      %24 = vector.shape_cast %21 : vector<8x128xf32> to vector<1x8x128xf32>
      tpu.vector_store %arg8[%c0_18, %c0_19, %c0_20], %24 {strides = array<i32>} : memref<1x8x128xf32, #tpu.memory_space<vmem>>, vector<1x8x128xf32>,
    } else {
    }
    return
  }
  func.func @transform_0(%arg0: i32, %arg1: i32, %arg2: i32, %arg3: i32) -> (i32, i32, i32) {
    %c0_i32 = arith.constant 0 : i32
    return %arg0, %arg1, %arg3 : i32, i32, i32
  }
  func.func @transform_1(%arg0: i32, %arg1: i32, %arg2: i32, %arg3: i32) -> (i32, i32) {
    %c0_i32 = arith.constant 0 : i32
    return %arg3, %arg2 : i32, i32
  }
  func.func @transform_2(%arg0: i32, %arg1: i32, %arg2: i32, %arg3: i32) -> (i32, i32, i32) {
    %c0_i32 = arith.constant 0 : i32
    %c0_i32_0 = arith.constant 0 : i32
    return %arg0, %c0_i32, %arg2 : i32, i32, i32
  }
  func.func @transform_3(%arg0: i32, %arg1: i32, %arg2: i32, %arg3: i32) -> (i32, i32) {
    %c0_i32 = arith.constant 0 : i32
    %c0_i32_0 = arith.constant 0 : i32
    return %c0_i32, %arg2 : i32, i32
  }
  func.func @transform_4(%arg0: i32, %arg1: i32, %arg2: i32, %arg3: i32) -> (i32, i32, i32) {
    %c0_i32 = arith.constant 0 : i32
    return %arg0, %arg1, %arg2 : i32, i32, i32
  }
}

</mosaic_0001>

<bundles_post_ra>
// kernel: tpu_custom_call.1
= control target key start
LH: loop header
LB: loop body
LE: loop exit
PB: predicated region body
PF: predicated region fallthrough
CT: control target
= control target key end

     0   :  { %9 = vsyncpa [#allocation4], 0  ;;  %s1137_s0 = inlined_call_operand.hbm [shape: f32[2,8,128], index: 0, kind: input, shape index: {}]   ;;  %s1138_s1 = inlined_call_operand.hbm [shape: bf16[128,128], index: 1, kind: input, shape index: {}]   ;;  %s1139_s2 = inlined_call_operand.vmem [shape: f32[2,1,128], index: 2, kind: input, shape index: {}]   ;;  %s1140_s3 = inlined_call_operand.vmem [shape: f32[1,128], index: 3, kind: input, shape index: {}]   ;;  %s1141_s4 = inlined_call_operand.hbm [shape: f32[2,8,128], index: 4, kind: output, shape index: {}]  }
   0x1   :  { %11 = vsyncpa [#allocation4 + $0x1], 0 }
   0x2   :  { %12 = vsyncpa [#allocation7], 0 }
   0x3   :  { %13 = vsyncpa [#allocation5], 0 }
   0x4   :  { %15 = vsyncpa [#allocation5 + $0x1], 0  ;;  %s911_s15 = smov 0   ;;  %s913_s16 = smov 0  }
   0x5   :  { %s915_s17 = smov 0   ;;  %s917_s18 = smov 0  }
   0x6   :  { %s919_s19 = smov 0   ;;  %s921_s20 = smov 0  }
   0x7 LB: > { %s593_s21 = sadd.s32 4294967295, %s877_s20   ;;  %s594_s22 = sadd.s32 4294967294, %s877_s20   ;;  %s877_s20 = sphi %s921_s20, %s21_s20   ;;  %s873_s19 = sphi %s919_s19, %s1165_s19   ;;  %s869_s18 = sphi %s917_s18, %s1164_s18   ;;  %s865_s17 = sphi %s915_s17, %s1163_s17   ;;  %s861_s16 = sphi %s913_s16, %s1162_s16   ;;  %s857_s15 = sphi %s911_s15, %s1161_s15  }
   0x8   : > { %p71_p0 = scmp.ne.s32.totalorder %s861_s16, %s857_s15  ;;  %p945_p1 = scmp.eq.s32.totalorder %s593_s21, 0 }
   0x9   : > { %p949_p2 = scmp.eq.s32.totalorder %s593_s21, 1  ;;  %p187_p3 = scmp.eq.s32.totalorder %s594_s22, 1 }
   0xa   : > { %s1146_s23 = scalar_select %p945_p1, 1, 0 }
   0xb   : > { %s1147_s24 = scalar_select %p949_p2, 1, 0 }
   0xc   : > { %p955_p4 = por %p945_p1, %p71_p0  ;;  %p595_p5 = scmp.ge.s32.totalorder %s877_s20, 1 }
   0xd   : > { %p960_p6 = por %p187_p3, %p71_p0  ;;  %p194_p7 = scmp.lt.s32.totalorder %s877_s20, 3 }
   0xe   : > { %s1148_s25 = scalar_select %p955_p4, 1, 0 }
   0xf   : > { %s1149_s26 = scalar_select %p960_p6, 1, 0 }
  0x10   : > { %p965_p8 = pnand %p595_p5, %p194_p7  ;;  %s879_s28 = smov [#allocation6]  }
  0x11   : > { %s210_s29 = sshll.u32 %s879_s28, 4  ;;  %s47_s5 = sadd.s32 1, %s873_s19  ;;  %s211_s29 = int_to_ptr.vmem [resolvable:$true] %s210_s29 }
  0x12   : > { %s1150_s27 = scalar_select %p965_p8, 1, 0 }
  0x13   : > { %p656_p9 = pneg %p965_p8  ;;  %s733_s8 = scalar_lea.hbm %s1138_s1, 1024 }
  0x14   : > { %p734_p12 = scmp.ne.s32.totalorder %s1138_s1, %s733_s8  ;;  %p740_p5 = scmp.lt.u32.totalorder %s733_s8, %s1138_s1 }
  0x15   : > { %p974_p11 = pnand %p656_p9, %p945_p1 }
  0x17   : > { %p735_p13 = pneg %p974_p11 }
  0x19   : > { %p736_p0 = pnand %p735_p13, %p734_p12 }
  0x1b   : > { %p737_p3 = pneg %p736_p0 }
  0x1d   : > { %p742_p7 = pnand %p740_p5, %p737_p3 }
  0x1f   : > { %745 = shalt.err (!%p742_p7)
}
  0x20   : > { %s746_s13 = scalar_lea.vmem %s211_s29, 1024  ;;  %p754_p1 = scmp.lt.s32.totalorder %s211_s29, %s211_s29 }
  0x21   : > { %p747_p9 = scmp.ne.s32.totalorder %s211_s29, %s746_s13  ;;  %p755_p4 = scmp.lt.s32.totalorder %s746_s13, %s746_s13 }
  0x23   : > { %p749_p10 = pnand %p747_p9, %p735_p13  ;;  %p756_p8 = por %p755_p4, %p754_p1 }
  0x25   : > { %p750_p6 = pneg %p749_p10 }
  0x27   : > { %p757_p2 = pnand %p756_p8, %p750_p6 }
  0x29   : > { %760 = shalt.err (!%p757_p2)
}
  0x2a   : > { %s880_s14 = smov 64   ;;  %s881_s21 = smov 4  }
  0x2b   : > { %659 = dma.hbm_to_vmem [thread:$0]  (!%p974_p11), %s1138_s1, 1024, %s211_s29, [#allocation7], %s880_s14, %s880_s14, %s881_s21  }
  0x2c   : > { %p49_p1 = scmp.ge.s32.totalorder %s47_s5, 2  ;;  %s58_s6 = sadd.s32 1, %s865_s17 }
  0x2d   : > { %p65_p2 = scmp.ne.s32.totalorder %s865_s17, %s861_s16  ;;  %p66_p4 = scmp.eq.s32.totalorder %s877_s20, 0 }
  0x2e   : > { %s1167_s5 = smov (%p49_p1, %s47_s5), 0  ;;  %p1153_p8 = scmp.ne.s32.totalorder %s1147_s24, 0 }
  0x2f   : > { %p1001_p6 = por %p66_p4, %p65_p2  ;;  %s51_s30 = ssub.s32 %s873_s19, %s1167_s5 }
  0x30   : > { %p1007_p10 = por %p1153_p8, %p65_p2  ;;  %p669_p12 = scmp.lt.s32.totalorder %s877_s20, 2 }
  0x31   : > { %p56_p11 = scmp.eq.s32.totalorder %s51_s30, 0  ;;  %s230_s29 = sand.u32 1, %s865_s17  }
  0x32   : > { %s599_s9 = sshll.u32 %s230_s29, 3  ;;  %s600_s11 = sshll.u32 %s873_s19, 7 }
  0x33   : > { %s1016_s10 = scalar_select %p56_p11, %s865_s17, %s58_s6  }
  0x34   : > { %s1022_s14 = scalar_lea.hbm %s1137_s0, %s600_s11  ;;  %s234_s24 = scalar_lea.vmem [#allocation3], %s599_s9 }
  0x35   : > { %s243_s21 = sshll.u32 %s234_s24, 4  ;;  %p1028_p13 = pnand %p669_p12, %p1001_p6  ;;  %s1024_s21 = int_to_ptr.vmem [resolvable:$true] %s243_s21 }
  0x36   : > { %s231_s28 = scalar_lea.sflag [#allocation4], %s230_s29  ;;  %s761_s6 = scalar_lea.hbm %s1022_s14, 128 }
  0x37   : > { %p762_p0 = scmp.ne.s32.totalorder %s1022_s14, %s761_s6  ;;  %p763_p3 = pneg %p1028_p13 }
  0x38   : > { %s766_s11 = scalar_lea.hbm %s1137_s0, 256  ;;  %p767_p9 = scmp.lt.u32.totalorder %s1022_s14, %s1137_s0 }
  0x39   : > { %p764_p5 = pnand %p763_p3, %p762_p0  ;;  %p768_p1 = scmp.lt.u32.totalorder %s766_s11, %s761_s6 }
  0x3a   : > { %p770_p4 = scmp.lt.u32.totalorder %s761_s6, %s1022_s14 }
  0x3b   : > { %p765_p7 = pneg %p764_p5  ;;  %p769_p2 = por %p768_p1, %p767_p9 }
  0x3d   : > { %p771_p6 = por %p770_p4, %p769_p2 }
  0x3f   : > { %p772_p8 = pnand %p771_p6, %p765_p7 }
  0x41   : > { %775 = shalt.err (!%p772_p8)
}
  0x42   : > { %s776_s29 = scalar_lea.vmem %s1024_s21, 128  ;;  %s882_s13 = smov [#allocation3]  }
  0x43   : > { %p777_p12 = scmp.ne.s32.totalorder %s1024_s21, %s776_s29  ;;  %s781_s24 = sshll.u32 %s882_s13, 4  ;;  %s782_s24 = int_to_ptr.vmem [resolvable:$false] %s781_s24 }
  0x44   : > { %s783_s30 = scalar_lea.vmem %s782_s24, 256  ;;  %p784_p5 = scmp.lt.s32.totalorder %s1024_s21, %s782_s24 }
  0x45   : > { %p779_p11 = pnand %p777_p12, %p763_p3  ;;  %p785_p9 = scmp.lt.s32.totalorder %s783_s30, %s776_s29 }
  0x47   : > { %p780_p0 = pneg %p779_p11  ;;  %p786_p1 = por %p785_p9, %p784_p5 }
  0x49   : > { %p787_p2 = pnand %p786_p1, %p780_p0 }
  0x4b   : > { %790 = shalt.err (!%p787_p2)
}
  0x4c   : > { %663 = dma.hbm_to_vmem [thread:$0]  (!%p1028_p13), %s1022_s14, 128, %s1024_s21, %s231_s28  }
  0x4d   : > { %p1156_p7 = scmp.ne.s32.totalorder %s1150_s27, 0 }
  0x4e   : > { %s1060_s6 = sand.u32 (!%p1156_p7), 1, %s861_s16   ;;  %p1157_p3 = scmp.ne.s32.totalorder (!%p1156_p7), %s1148_s25, 0 }
  0x4f   : > { %261 = sbr.rel (%p1156_p7) target bundleno = 353 (0x161), region = 36  ;;  %s602_s9 = sshll.u32 (!%p1156_p7), %s1060_s6, 3 }
  0x50   : > { %s264_s11 = scalar_lea.sflag (!%p1156_p7), [#allocation4], %s1060_s6  ;;  %s267_s7 = scalar_lea.vmem (!%p1156_p7), [#allocation3], %s602_s9 }
  0x56   : > { %844 = dma.done.wait (%p1157_p3), %s264_s11, 128  }
  0x57   : > { %846 = vsyncadd (%p1157_p3), %s264_s11, 4294967168  ;;  %p1158_p13 = scmp.ne.s32.totalorder %s1146_s23, 0 }
  0x59   : > { %848 = dma.done.wait (%p1158_p13), [#allocation7], 1024  }
  0x5a   : > { %850 = vsyncadd (%p1158_p13), [#allocation7], 4294966272  ;;  %v883_v0 = vmov 0.0   ;;  %vm884_vm0 = vmmov 0   ;;  %v725_v1 = vld [vmem:[#allocation6] sm:$0xff]   ;;  %v726_v2 = vld [vmem:[#allocation6 + $0x8] sm:$0xff]  }
  0x5b   : > { %628 = vmatprep.subr.bf16.mxu0 %v883_v0  ;;  %644 = vmatprep.mubr.msk.bf16.mxu0 %vm884_vm0, %v883_v0  ;;  %v727_v3 = vld [vmem:[#allocation6 + $0x10] sm:$0xff]   ;;  %v728_v4 = vld [vmem:[#allocation6 + $0x18] sm:$0xff]   ;;  %v729_v5 = vld [vmem:[#allocation6 + $0x20] sm:$0xff]   ;;  %p306_p4 = scmp.lt.s32.totalorder %s869_s18, 1  ;;  %s616_s28 = sshll.u32 %s869_s18, 7 }
  0x5c   : > { %629 = vmatpush3.bf16.msra.mxu0 %v725_v1  ;;  %v730_v6 = vld [vmem:[#allocation6 + $0x28] sm:$0xff]   ;;  %v731_v7 = vld [vmem:[#allocation6 + $0x30] sm:$0xff]   ;;  %v732_v8 = vld [vmem:[#allocation6 + $0x38] sm:$0xff]   ;;  %s304_s12 = scalar_lea.vmem [#allocation8], %s602_s9  ;;  %s1088_s30 = scalar_lea.hbm %s1141_s4, %s616_s28 }
  0x5d   : > { %630 = vmatprep.subr.bf16.mxu0 %v883_v0  ;;  %v322_v9 = vld [vmem:[%s267_s7] sm:$0xff]  ;;  %s307_s23 = scalar_select %p306_p4, %s869_s18, 1 }
  0x5e   : > { %v323_v10 = vpack.c.bf16 %v322_v9, %v322_v9  ;;  %v613_v11 = vld [vmem:[%s1140_s3] ss:$0 sm:$0xff]  ;;  %s467_s29 = sshll.u32 %s304_s12, 4  ;;  %s452_s18 = scalar_lea.sflag [#allocation5], %s1060_s6  ;;  %s1090_s29 = int_to_ptr.vmem [resolvable:$true] %s467_s29 }
  0x5f   : > { %s311_s14 = scalar_lea.vmem %s1139_s2, %s307_s23  ;;  %s791_s11 = scalar_lea.vmem %s1090_s29, 128 }
  0x60   : > { %631 = vmatpush3.bf16.msra.mxu0 %v726_v2  ;;  %v614_v13 = vld [vmem:[%s311_s14] ss:$0 sm:$0xff]  ;;  %p792_p6 = scmp.ne.s32.totalorder %s1090_s29, %s791_s11  ;;  %s885_s9 = smov [#allocation8]  }
  0x61   : > { %632 = vmatprep.subr.bf16.mxu0 %v883_v0  ;;  %s795_s7 = sshll.u32 %s885_s9, 4  ;;  %s796_s7 = int_to_ptr.vmem [resolvable:$false] %s795_s7 }
  0x62   : > { %p793_p8 = pnand %p792_p6, %p1007_p10  ;;  %s797_s23 = scalar_lea.vmem %s796_s7, 256 }
  0x63   : > { %p798_p11 = scmp.lt.s32.totalorder %s1090_s29, %s796_s7  ;;  %p799_p0 = scmp.lt.s32.totalorder %s797_s23, %s791_s11 }
  0x64   : > { %633 = vmatpush3.bf16.msra.mxu0 %v727_v3  ;;  %p794_p12 = pneg %p793_p8 }
  0x65   : > { %634 = vmatprep.subr.bf16.mxu0 %v883_v0  ;;  %p800_p5 = por %p799_p0, %p798_p11 }
  0x67   : > { %p801_p9 = pnand %p800_p5, %p794_p12 }
  0x68   : > { %635 = vmatpush3.bf16.msra.mxu0 %v728_v4 }
  0x69   : > { %636 = vmatprep.subr.bf16.mxu0 %v883_v0 }
  0x6c   : > { %637 = vmatpush3.bf16.msra.mxu0 %v729_v5 }
  0x6d   : > { %638 = vmatprep.subr.bf16.mxu0 %v883_v0 }
  0x70   : > { %639 = vmatpush3.bf16.msra.mxu0 %v730_v6 }
  0x71   : > { %640 = vmatprep.subr.bf16.mxu0 %v883_v0 }
  0x74   : > { %641 = vmatpush3.bf16.msra.mxu0 %v731_v7 }
  0x75   : > { %642 = vmatprep.subr.bf16.mxu0 %v883_v0 }
  0x78   : > { %643 = vmatpush3.bf16.msra.mxu0 %v732_v8 }
  0x7b   : > { %645 = vmatmul.mubr.bf16.vlgmr.msra.gmra.mrb[0].mxu0 %v323_v10 }
 0x14e   : > { %v422_v12 = vpop.f32.mrb[0].mxu0 }
 0x14f   : > { %v442_v14 = vadd.f32 %v613_v11, %v422_v12  ;;  %v646_v15 = vpop.f32.mrb[1].mxu0 }
 0x150   : > { %v425_v16 = vpop.f32.mrb[2].mxu0 }
 0x151   : > { %v449_v17 = vmul.f32 %v614_v13, %v442_v14  ;;  %v647_v18 = vpop.f32.mrb[3].mxu0 }
 0x153   : > { %450 = vst [vmem:[%s304_s12] sm:$0xff] %v449_v17 }
 0x154   : > { %804 = shalt.err (!%p801_p9)
}
 0x155   : > { %s805_s6 = scalar_lea.hbm %s1088_s30, 128  ;;  %s809_s14 = scalar_lea.hbm %s1141_s4, 256 }
 0x156   : > { %p806_p1 = scmp.ne.s32.totalorder %s1088_s30, %s805_s6  ;;  %p810_p3 = scmp.lt.u32.totalorder %s1088_s30, %s1141_s4 }
 0x157   : > { %p811_p13 = scmp.lt.u32.totalorder %s809_s14, %s805_s6  ;;  %p813_p6 = scmp.lt.u32.totalorder %s805_s6, %s1088_s30 }
 0x158   : > { %p807_p2 = pnand %p806_p1, %p1007_p10 }
 0x159   : > { %p812_p4 = por %p811_p13, %p810_p3 }
 0x15a   : > { %p808_p7 = pneg %p807_p2 }
 0x15b   : > { %p814_p8 = por %p813_p6, %p812_p4 }
 0x15d   : > { %p815_p12 = pnand %p814_p8, %p808_p7 }
 0x15f   : > { %818 = shalt.err (!%p815_p12)
}
 0x160   : > { %654 = dma.vmem_to_hbm [thread:$0]  (%p1007_p10), %s1090_s29, 128, %s1088_s30, %s452_s18  }
 0x161 PF: > { %s479_s28 = sand.u32 1, %s857_s15   ;;  %p1159_p11 = scmp.ne.s32.totalorder %s1149_s26, 0 }
 0x162   : > { %p1160_p0 = scmp.ge.s32.totalorder %s877_s20, 2  ;;  %s480_s12 = scalar_lea.sflag [#allocation5], %s479_s28 }
 0x164   : > { %p665_p5 = pnand %p1160_p0, %p1159_p11 }
 0x166   : > { %852 = dma.done.wait (!%p665_p5), %s480_s12, 128  }
 0x167   : > { %854 = vsyncadd (!%p665_p5), %s480_s12, 4294967168  ;;  %s21_s20 = sadd.s32 1, %s877_s20   ;;  %s1161_s15 = smov %s861_s16 }
 0x168   : > { %p18_p9 = scmp.ge.s32.totalorder %s21_s20, 4   ;;  %s1162_s16 = smov %s865_s17 }
 0x169   : > { %s1163_s17 = smov %s1016_s10  ;;  %s1164_s18 = smov %s873_s19 }
 0x16a   : > { %s1165_s19 = smov %s1167_s5  ;;  %20 = sbr.rel (!%p18_p9) target bundleno = 7 (0x7), region = 100 }
 0x171   :  { %485 = vsyncpa [#allocation4], 1 }
 0x172   :  { %487 = vsyncpa [#allocation4 + $0x1], 1 }
 0x173   :  { %488 = vsyncpa [#allocation7], 1 }
 0x174   :  { %489 = vsyncpa [#allocation5], 1 }
 0x175   :  { %491 = vsyncpa [#allocation5 + $0x1], 1 }

</bundles_post_ra>
